<compile_context>
chip_gen: v5e
topology: v5e:2x2
jax: 0.10.0
libtpu: 0.0.40
codegen_flags: <defaults>
</compile_context>

<pallas_src>
import jax
import jax.numpy as jnp
from jax import lax
from jax.experimental import pallas as pl
from jax.experimental.pallas import tpu as pltpu


NEG_BIG = -1.0e30  # finite "-inf" for padded vocabulary columns


def _round_up(x, m):
    return (x + m - 1) // m * m


def decoder_rnn_head_kernel(tok_ref,     # SMEM (T*Bp,)  int32   scalar-prefetched token ids
                            h0_ref,      # VMEM (Bp, H)  f32
                            emb_ref,     # VMEM (V, E)   f32     embedding table
                            wih_ref,     # VMEM (E, H)   bf16    W_ih^T
                            whh_ref,     # VMEM (H, H)   f32     W_hh^T
                            b_ref,       # VMEM (1, H)   f32     b_ih + b_hh
                            wlin_ref,    # VMEM (H, TN)  bf16    W_lin^T tile j
                            blin_ref,    # VMEM (1, TN)  f32     bias tile j (padding = -1e30)
                            logits_ref,  # out  (Bp, TN) f32     raw logits tile j
                            lse_ref,     # out  (Bp, 1)  f32     global log-sum-exp (resident)
                            hout_ref,    # out  (Bp, H)  f32     final hidden state (resident)
                            h1_sc,       # VMEM (Bp, H)  f32     out[:, 0, :]
                            m_sc,        # VMEM (Bp, 1)  f32     running max
                            l_sc,        # VMEM (Bp, 1)  f32     running sum
                            xemb_sc):    # VMEM (T*Bp,E) f32     gathered embeddings
    j = pl.program_id(0)
    n_v = pl.num_programs(0)
    tbp = xemb_sc.shape[0]
    bp, _ = h0_ref.shape
    n_vocab = emb_ref.shape[0]
    t_steps = tbp // bp

    # ---- grid step 0: embedding gather + full RNN recurrence (done exactly once;
    # results live in VMEM scratch / resident outputs for the remaining head tiles) ----
    @pl.when(j == 0)
    def _():
        # Real gather: SMEM token ids drive dynamic row reads of the VMEM table.
        # TODO(synk): training-mode dropout on the embedding is not implemented
        # (eval-mode identity semantics).
        @pl.loop(0, tbp)
        def _(i):
            idx = jnp.minimum(jnp.maximum(tok_ref[i], 0), n_vocab - 1)
            xemb_sc[pl.ds(i, 1), :] = emb_ref[pl.ds(idx, 1), :]

        # Hoisted input projection: one batched (T*Bp, E) @ (E, H) bf16 MXU matmul.
        x_proj = jnp.dot(xemb_sc[...].astype(jnp.bfloat16), wih_ref[...],
                         preferred_element_type=jnp.float32) + b_ref[...]

        # Serial recurrence h_t = tanh(x_t + h_{t-1} @ W_hh), kept in f32 so the hidden
        # state is never re-rounded to bf16.  Unrolled (T is small); for T > ~16 switch
        # to lax.fori_loop(..., unroll=4..8) with lax.dynamic_slice on x_proj.
        whh = whh_ref[...]
        h = jnp.tanh(x_proj[0:bp, :]
                     + jnp.dot(h0_ref[...], whh, preferred_element_type=jnp.float32))
        h1_sc[...] = h                               # out[:, 0, :] feeds the output head
        for t in range(1, t_steps):
            h = jnp.tanh(x_proj[t * bp:(t + 1) * bp, :]
                         + jnp.dot(h, whh, preferred_element_type=jnp.float32))
        hout_ref[...] = h

        # init online log-sum-exp accumulators
        m_sc[...] = jnp.full_like(m_sc, -jnp.inf)
        l_sc[...] = jnp.zeros_like(l_sc)

    # ---- per-tile output head: logits[:, j*TN:(j+1)*TN] = h1 @ W_lin_tile + b_tile ----
    logits = (jnp.dot(h1_sc[...].astype(jnp.bfloat16), wlin_ref[...],
                      preferred_element_type=jnp.float32) + blin_ref[...])
    logits_ref[...] = logits

    # online log-sum-exp across V tiles (padded columns sit at -1e30 -> exp() == 0)
    m_prev = m_sc[...]
    m_new = jnp.maximum(m_prev, jnp.max(logits, axis=1, keepdims=True))
    l_sc[...] = (l_sc[...] * jnp.exp(m_prev - m_new)
                 + jnp.sum(jnp.exp(logits - m_new), axis=1, keepdims=True))
    m_sc[...] = m_new

    @pl.when(j == n_v - 1)
    def _():
        lse_ref[...] = m_sc[...] + jnp.log(l_sc[...])


def logsoftmax_finalize_kernel(logits_ref, lse_ref, logp_ref):
    # logp tile = logits tile - global log-sum-exp (lane-dense 128-multiple stores).
    logp_ref[...] = logits_ref[...] - lse_ref[...]


def decoder_forward(tokens, hidden, params, *, tn=128):
    """tokens: (B, T) int32; hidden: (1, B, H) f32 -> (logp (B, V), hidden (1, B, H))."""
    emb_table = params["embedding"]        # (V, E) f32
    w_ih = params["w_ih"]                  # (E, H) bf16
    w_hh = params["w_hh"]                  # (H, H) f32
    b = params["b"]                        # (1, H) f32
    w_lin = params["w_lin"]                # (H, V) bf16
    b_lin = params["b_lin"]                # (1, V) f32

    B, T = tokens.shape
    V, E = emb_table.shape
    H = w_hh.shape[0]
    assert T >= 1, "decoder requires at least one time step"

    Bp = _round_up(B, 8)                   # sublane padding
    Vp = _round_up(V, tn)                  # lane padding (tn is a multiple of 128)
    NV = Vp // tn                          # V tiles of the output head

    # time-major flat token ids (row i = t*Bp + b); padded batch rows use id 0
    tok_tb = jnp.zeros((T, Bp), jnp.int32).at[:, :B].set(tokens.astype(jnp.int32).T)
    tok_flat = tok_tb.reshape(T * Bp)
    h0 = jnp.zeros((Bp, H), jnp.float32).at[:B].set(hidden[0].astype(jnp.float32))
    w_lin_p = jnp.zeros((H, Vp), jnp.bfloat16).at[:, :V].set(w_lin)
    b_lin_p = jnp.full((1, Vp), NEG_BIG, jnp.float32).at[:, :V].set(b_lin)

    def fixed(shape):
        zeros = (0,) * len(shape)
        return pl.BlockSpec(shape, lambda j, tok: zeros)

    grid_spec = pltpu.PrefetchScalarGridSpec(
        num_scalar_prefetch=1,             # token ids land in SMEM, feed every index_map
        grid=(NV,),
        in_specs=[
            fixed((Bp, H)),                                   # h0
            fixed((V, E)),                                    # embedding table (f32)
            fixed((E, H)),                                    # W_ih^T (bf16)
            fixed((H, H)),                                    # W_hh^T (f32, accuracy)
            fixed((1, H)),                                    # b_ih + b_hh
            pl.BlockSpec((H, tn), lambda j, tok: (0, j)),     # W_lin^T tile (bf16)
            pl.BlockSpec((1, tn), lambda j, tok: (0, j)),     # b_lin tile
        ],
        out_specs=(
            pl.BlockSpec((Bp, tn), lambda j, tok: (0, j)),    # raw logits tile
            pl.BlockSpec((Bp, 1), lambda j, tok: (0, 0)),     # log-sum-exp (resident)
            pl.BlockSpec((Bp, H), lambda j, tok: (0, 0)),     # final hidden (resident)
        ),
        scratch_shapes=[
            pltpu.VMEM((Bp, H), jnp.float32),                 # h1 = out[:, 0, :]
            pltpu.VMEM((Bp, 1), jnp.float32),                 # running max
            pltpu.VMEM((Bp, 1), jnp.float32),                 # running sum
            pltpu.VMEM((T * Bp, E), jnp.float32),             # gathered embeddings
        ],
    )

    logits, lse, hout = pl.pallas_call(
        decoder_rnn_head_kernel,
        out_shape=(
            jax.ShapeDtypeStruct((Bp, Vp), jnp.float32),
            jax.ShapeDtypeStruct((Bp, 1), jnp.float32),
            jax.ShapeDtypeStruct((Bp, H), jnp.float32),
        ),
        grid_spec=grid_spec,
        # The V axis carries the j==0 recurrence scratch and the running log-sum-exp,
        # so it must be 'arbitrary'.  (On v7x, shard the head over the 2 TensorCores
        # by batch or by recomputing the cheap recurrence per core; halve tn there.)
        compiler_params=pltpu.CompilerParams(
            dimension_semantics=("arbitrary",)),
    )(tok_flat, h0, emb_table, w_ih, w_hh, b, w_lin_p, b_lin_p)

    logp_full = pl.pallas_call(
        logsoftmax_finalize_kernel,
        out_shape=jax.ShapeDtypeStruct((Bp, Vp), jnp.float32),
        grid=(NV,),
        in_specs=[
            pl.BlockSpec((Bp, tn), lambda j: (0, j)),
            pl.BlockSpec((Bp, 1), lambda j: (0, 0)),
        ],
        out_specs=pl.BlockSpec((Bp, tn), lambda j: (0, j)),
        compiler_params=pltpu.CompilerParams(
            dimension_semantics=("parallel",)),
    )(logits, lse)

    return logp_full[:B, :V], hout[None, :B, :]


def decoder_reference(tokens, hidden, params):
    """Pure-JAX f32 reference matching the PyTorch module (eval mode)."""
    emb_table = params["embedding"].astype(jnp.float32)
    w_ih = params["w_ih"].astype(jnp.float32)
    w_hh = params["w_hh"].astype(jnp.float32)
    b = params["b"].astype(jnp.float32)
    w_lin = params["w_lin"].astype(jnp.float32)
    b_lin = params["b_lin"].astype(jnp.float32)

    emb = jnp.take(emb_table, tokens, axis=0)                 # (B, T, E)
    h = hidden[0].astype(jnp.float32)
    B, T = tokens.shape
    out0 = None
    for t in range(T):
        h = jnp.tanh(emb[:, t, :] @ w_ih + h @ w_hh + b)
        if t == 0:
            out0 = h
    logits = out0 @ w_lin + b_lin
    return jax.nn.log_softmax(logits, axis=1), h[None, :, :]


def init_params(key, emb_size, decoder_hidden_size, output_size):
    """Deterministic parameter init (PyTorch-style uniform ranges).

    MXU weights (w_ih, w_lin) are cast to bf16 ONCE here (halves their HBM/VMEM
    footprint; no in-kernel bulk casts).  w_hh stays f32 so the serial recurrence
    never re-rounds the hidden state.  Weights are stored (in_features, out_features).
    """
    E, H, V = emb_size, decoder_hidden_size, output_size
    ks = jax.random.split(key, 7)
    bound = 1.0 / jnp.sqrt(H)
    return {
        "embedding": jax.random.normal(ks[0], (V, E), jnp.float32),
        "w_ih": jax.random.uniform(ks[1], (E, H), jnp.float32, -bound, bound).astype(jnp.bfloat16),
        "w_hh": jax.random.uniform(ks[2], (H, H), jnp.float32, -bound, bound),
        "b": (jax.random.uniform(ks[3], (1, H), jnp.float32, -bound, bound)
              + jax.random.uniform(ks[4], (1, H), jnp.float32, -bound, bound)),
        "w_lin": jax.random.uniform(ks[5], (H, V), jnp.float32, -bound, bound).astype(jnp.bfloat16),
        "b_lin": jax.random.uniform(ks[6], (1, V), jnp.float32, -bound, bound),
    }


if __name__ == "__main__":
    # small shapes consistent with the module's forward
    B, T = 2, 8                  # (batch_size, seq_len) token ids
    emb_size = 32
    encoder_hidden_size = 32     # unused by forward (decoder hidden arrives as `hidden`)
    decoder_hidden_size = 32
    output_size = 160            # vocab; pads to 256 -> exercises two 128-wide V tiles

    key = jax.random.PRNGKey(0)
    k_par, k_tok, k_hid = jax.random.split(key, 3)

    params = init_params(k_par, emb_size, decoder_hidden_size, output_size)
    tokens = jax.random.randint(k_tok, (B, T), 0, output_size, dtype=jnp.int32)
    hidden = jax.random.normal(k_hid, (1, B, decoder_hidden_size), jnp.float32)

    fwd = jax.jit(decoder_forward)
    logp, hidden_out = fwd(tokens, hidden, params)
    jax.block_until_ready((logp, hidden_out))

    assert logp.shape == (B, output_size)
    assert hidden_out.shape == (1, B, decoder_hidden_size)
    # log-softmax rows should (approximately) exponentiate-sum to 1
    assert jnp.allclose(jnp.sum(jnp.exp(logp), axis=1), 1.0, atol=1e-4)

    # compare against f32 pure-JAX reference (kernel uses bf16 MXU operands -> loose tol)
    logp_ref, hidden_ref = decoder_reference(tokens, hidden, params)
    err_logp = float(jnp.max(jnp.abs(logp - logp_ref)))
    err_hid = float(jnp.max(jnp.abs(hidden_out - hidden_ref)))
    assert err_logp < 5e-2, err_logp
    assert err_hid < 5e-2, err_hid

    print("KERNEL_OK")
</pallas_src>

<mosaic_0001>
module attributes {stable_mosaic.version = 11 : i64} {
  func.func @logsoftmax_finalize_kernel(%arg0: i32, %arg1: memref<8x128xf32, #tpu.memory_space<vmem>>, %arg2: memref<8x1xf32, #tpu.memory_space<vmem>>, %arg3: memref<8x128xf32, #tpu.memory_space<vmem>>) attributes {dimension_semantics = [#tpu.dimension_semantics<parallel>], iteration_bounds = array<i64: 2>, scalar_prefetch = 0 : i64, scratch_operands = 0 : i64, tpu.core_type = #tpu.core_type<tc>, window_params = [{transform_indices = @transform_0, window_bounds = array<i64: 8, 128>}, {pipeline_mode = #tpu.pipeline_mode<synchronous>, transform_indices = @transform_1, window_bounds = array<i64: 8, 1>}, {transform_indices = @transform_2, window_bounds = array<i64: 8, 128>}]} {
    %c0 = arith.constant 0 : index
    %c0_0 = arith.constant 0 : index
    %0 = vector.load %arg1[%c0, %c0_0] : memref<8x128xf32, #tpu.memory_space<vmem>>, vector<8x128xf32>
    %c0_1 = arith.constant 0 : index
    %c0_2 = arith.constant 0 : index
    %1 = vector.load %arg2[%c0_1, %c0_2] : memref<8x1xf32, #tpu.memory_space<vmem>>, vector<8x1xf32>
    %2 = vector.broadcast %1 : vector<8x1xf32> to vector<8x128xf32>
    %3 = arith.subf %0, %2 : vector<8x128xf32>
    %c0_3 = arith.constant 0 : index
    %c0_4 = arith.constant 0 : index
    %4 = vector.load %arg3[%c0_3, %c0_4] : memref<8x128xf32, #tpu.memory_space<vmem>>, vector<8x128xf32>
    tpu.vector_store %arg3[%c0_3, %c0_4], %3 {strides = array<i32>} : memref<8x128xf32, #tpu.memory_space<vmem>>, vector<8x128xf32>,
    return
  }
  func.func @transform_0(%arg0: i32) -> (i32, i32) {
    %c0_i32 = arith.constant 0 : i32
    %c0_i32_0 = arith.constant 0 : i32
    return %c0_i32, %arg0 : i32, i32
  }
  func.func @transform_1(%arg0: i32) -> (i32, i32) {
    %c0_i32 = arith.constant 0 : i32
    %c0_i32_0 = arith.constant 0 : i32
    %c0_i32_1 = arith.constant 0 : i32
    return %c0_i32, %c0_i32_0 : i32, i32
  }
  func.func @transform_2(%arg0: i32) -> (i32, i32) {
    %c0_i32 = arith.constant 0 : i32
    %c0_i32_0 = arith.constant 0 : i32
    return %c0_i32, %arg0 : i32, i32
  }
}

module attributes {stable_mosaic.version = 11 : i64} {
  func.func @decoder_rnn_head_kernel(%arg0: i32, %arg1: memref<64xi32, #tpu.memory_space<smem>>, %arg2: memref<8x32xf32, #tpu.memory_space<vmem>>, %arg3: memref<160x32xf32, #tpu.memory_space<vmem>>, %arg4: memref<32x32xbf16, #tpu.memory_space<vmem>>, %arg5: memref<32x32xf32, #tpu.memory_space<vmem>>, %arg6: memref<1x32xf32, #tpu.memory_space<vmem>>, %arg7: memref<32x128xbf16, #tpu.memory_space<vmem>>, %arg8: memref<1x128xf32, #tpu.memory_space<vmem>>, %arg9: memref<8x128xf32, #tpu.memory_space<vmem>>, %arg10: memref<8x1xf32, #tpu.memory_space<vmem>>, %arg11: memref<8x32xf32, #tpu.memory_space<vmem>>, %arg12: memref<8x32xf32, #tpu.memory_space<vmem>>, %arg13: memref<8x1xf32, #tpu.memory_space<vmem>>, %arg14: memref<8x1xf32, #tpu.memory_space<vmem>>, %arg15: memref<64x32xf32, #tpu.memory_space<vmem>>) attributes {dimension_semantics = [#tpu.dimension_semantics<arbitrary>], iteration_bounds = array<i64: 2>, scalar_prefetch = 1 : i64, scratch_operands = 4 : i64, tpu.core_type = #tpu.core_type<tc>, window_params = [{pipeline_mode = #tpu.pipeline_mode<synchronous>, transform_indices = @transform_0, window_bounds = array<i64: 8, 32>}, {pipeline_mode = #tpu.pipeline_mode<synchronous>, transform_indices = @transform_1, window_bounds = array<i64: 160, 32>}, {pipeline_mode = #tpu.pipeline_mode<synchronous>, transform_indices = @transform_2, window_bounds = array<i64: 32, 32>}, {pipeline_mode = #tpu.pipeline_mode<synchronous>, transform_indices = @transform_3, window_bounds = array<i64: 32, 32>}, {pipeline_mode = #tpu.pipeline_mode<synchronous>, transform_indices = @transform_4, window_bounds = array<i64: 1, 32>}, {transform_indices = @transform_5, window_bounds = array<i64: 32, 128>}, {transform_indices = @transform_6, window_bounds = array<i64: 1, 128>}, {transform_indices = @transform_7, window_bounds = array<i64: 8, 128>}, {pipeline_mode = #tpu.pipeline_mode<synchronous>, transform_indices = @transform_8, window_bounds = array<i64: 8, 1>}, {pipeline_mode = #tpu.pipeline_mode<synchronous>, transform_indices = @transform_9, window_bounds = array<i64: 8, 32>}]} {
    %c0_i32 = arith.constant 0 : i32
    %0 = arith.cmpi eq, %arg0, %c0_i32 : i32
    %1 = arith.extui %0 : i1 to i32
    %c0_i32_0 = arith.constant 0 : i32
    %2 = arith.cmpi ne, %1, %c0_i32_0 : i32
    scf.if %2 {
      %c0_i32_19 = arith.constant 0 : i32
      %c64_i32 = arith.constant 64 : i32
      %30 = arith.addi %c0_i32_19, %c64_i32 : i32
      %c1_i32_20 = arith.constant 1 : i32
      scf.for %arg16 = %c0_i32_19 to %30 step %c1_i32_20  : i32 {
        %c1_i32_51 = arith.constant 1 : i32
        %78 = arith.muli %arg16, %c1_i32_51 : i32
        %c0_i32_52 = arith.constant 0 : i32
        %79 = arith.addi %c0_i32_52, %78 : i32
        %80 = arith.index_cast %79 : i32 to index
        %81 = memref.load %arg1[%80] : memref<64xi32, #tpu.memory_space<smem>>
        %c0_i32_53 = arith.constant 0 : i32
        %82 = arith.maxsi %81, %c0_i32_53 : i32
        %c159_i32 = arith.constant 159 : i32
        %83 = arith.minsi %82, %c159_i32 : i32
        %84 = arith.index_cast %83 : i32 to index
        %c0_54 = arith.constant 0 : index
        %85 = vector.load %arg3[%84, %c0_54] : memref<160x32xf32, #tpu.memory_space<vmem>>, vector<1x32xf32>
        %86 = arith.index_cast %79 : i32 to index
        %c0_55 = arith.constant 0 : index
        %87 = vector.load %arg15[%86, %c0_55] : memref<64x32xf32, #tpu.memory_space<vmem>>, vector<1x32xf32>
        tpu.vector_store %arg15[%86, %c0_55], %85 {strides = array<i32>} : memref<64x32xf32, #tpu.memory_space<vmem>>, vector<1x32xf32>,
      }
      %c64_i32_21 = arith.constant 64 : i32
      %c0_22 = arith.constant 0 : index
      %c0_23 = arith.constant 0 : index
      %31 = vector.load %arg15[%c0_22, %c0_23] : memref<64x32xf32, #tpu.memory_space<vmem>>, vector<64x32xf32>
      %32 = arith.truncf %31 : vector<64x32xf32> to vector<64x32xbf16>
      %c0_24 = arith.constant 0 : index
      %c0_25 = arith.constant 0 : index
      %33 = vector.load %arg4[%c0_24, %c0_25] : memref<32x32xbf16, #tpu.memory_space<vmem>>, vector<32x32xbf16>
      %cst_26 = arith.constant dense<0.000000e+00> : vector<64x32xf32>
      %34 = tpu.matmul %32, %33, %cst_26 {dimension_numbers = #tpu.dot_dimension_numbers<[1], [0], [0], [1], [0, 0, 1, 1], [], []>} : vector<64x32xbf16>, vector<32x32xbf16>, vector<64x32xf32> -> vector<64x32xf32>
      %c0_27 = arith.constant 0 : index
      %c0_28 = arith.constant 0 : index
      %35 = vector.load %arg6[%c0_27, %c0_28] : memref<1x32xf32, #tpu.memory_space<vmem>>, vector<1x32xf32>
      %36 = vector.broadcast %35 : vector<1x32xf32> to vector<64x32xf32>
      %37 = arith.addf %34, %36 : vector<64x32xf32>
      %c0_29 = arith.constant 0 : index
      %c0_30 = arith.constant 0 : index
      %38 = vector.load %arg5[%c0_29, %c0_30] : memref<32x32xf32, #tpu.memory_space<vmem>>, vector<32x32xf32>
      %39 = vector.extract_strided_slice %37 {offsets = [0, 0], sizes = [8, 32], strides = [1, 1]} : vector<64x32xf32> to vector<8x32xf32>
      %c0_31 = arith.constant 0 : index
      %c0_32 = arith.constant 0 : index
      %40 = vector.load %arg2[%c0_31, %c0_32] : memref<8x32xf32, #tpu.memory_space<vmem>>, vector<8x32xf32>
      %cst_33 = arith.constant dense<0.000000e+00> : vector<8x32xf32>
      %41 = tpu.matmul %40, %38, %cst_33 {dimension_numbers = #tpu.dot_dimension_numbers<[1], [0], [0], [1], [0, 0, 1, 1], [], []>} : vector<8x32xf32>, vector<32x32xf32>, vector<8x32xf32> -> vector<8x32xf32>
      %42 = arith.addf %39, %41 : vector<8x32xf32>
      %43 = math.tanh %42 : vector<8x32xf32>
      %c0_34 = arith.constant 0 : index
      %c0_35 = arith.constant 0 : index
      %44 = vector.load %arg12[%c0_34, %c0_35] : memref<8x32xf32, #tpu.memory_space<vmem>>, vector<8x32xf32>
      tpu.vector_store %arg12[%c0_34, %c0_35], %43 {strides = array<i32>} : memref<8x32xf32, #tpu.memory_space<vmem>>, vector<8x32xf32>,
      %45 = vector.extract_strided_slice %37 {offsets = [8, 0], sizes = [8, 32], strides = [1, 1]} : vector<64x32xf32> to vector<8x32xf32>
      %cst_36 = arith.constant dense<0.000000e+00> : vector<8x32xf32>
      %46 = tpu.matmul %43, %38, %cst_36 {dimension_numbers = #tpu.dot_dimension_numbers<[1], [0], [0], [1], [0, 0, 1, 1], [], []>} : vector<8x32xf32>, vector<32x32xf32>, vector<8x32xf32> -> vector<8x32xf32>
      %47 = arith.addf %45, %46 : vector<8x32xf32>
      %48 = math.tanh %47 : vector<8x32xf32>
      %49 = vector.extract_strided_slice %37 {offsets = [16, 0], sizes = [8, 32], strides = [1, 1]} : vector<64x32xf32> to vector<8x32xf32>
      %cst_37 = arith.constant dense<0.000000e+00> : vector<8x32xf32>
      %50 = tpu.matmul %48, %38, %cst_37 {dimension_numbers = #tpu.dot_dimension_numbers<[1], [0], [0], [1], [0, 0, 1, 1], [], []>} : vector<8x32xf32>, vector<32x32xf32>, vector<8x32xf32> -> vector<8x32xf32>
      %51 = arith.addf %49, %50 : vector<8x32xf32>
      %52 = math.tanh %51 : vector<8x32xf32>
      %53 = vector.extract_strided_slice %37 {offsets = [24, 0], sizes = [8, 32], strides = [1, 1]} : vector<64x32xf32> to vector<8x32xf32>
      %cst_38 = arith.constant dense<0.000000e+00> : vector<8x32xf32>
      %54 = tpu.matmul %52, %38, %cst_38 {dimension_numbers = #tpu.dot_dimension_numbers<[1], [0], [0], [1], [0, 0, 1, 1], [], []>} : vector<8x32xf32>, vector<32x32xf32>, vector<8x32xf32> -> vector<8x32xf32>
      %55 = arith.addf %53, %54 : vector<8x32xf32>
      %56 = math.tanh %55 : vector<8x32xf32>
      %57 = vector.extract_strided_slice %37 {offsets = [32, 0], sizes = [8, 32], strides = [1, 1]} : vector<64x32xf32> to vector<8x32xf32>
      %cst_39 = arith.constant dense<0.000000e+00> : vector<8x32xf32>
      %58 = tpu.matmul %56, %38, %cst_39 {dimension_numbers = #tpu.dot_dimension_numbers<[1], [0], [0], [1], [0, 0, 1, 1], [], []>} : vector<8x32xf32>, vector<32x32xf32>, vector<8x32xf32> -> vector<8x32xf32>
      %59 = arith.addf %57, %58 : vector<8x32xf32>
      %60 = math.tanh %59 : vector<8x32xf32>
      %61 = vector.extract_strided_slice %37 {offsets = [40, 0], sizes = [8, 32], strides = [1, 1]} : vector<64x32xf32> to vector<8x32xf32>
      %cst_40 = arith.constant dense<0.000000e+00> : vector<8x32xf32>
      %62 = tpu.matmul %60, %38, %cst_40 {dimension_numbers = #tpu.dot_dimension_numbers<[1], [0], [0], [1], [0, 0, 1, 1], [], []>} : vector<8x32xf32>, vector<32x32xf32>, vector<8x32xf32> -> vector<8x32xf32>
      %63 = arith.addf %61, %62 : vector<8x32xf32>
      %64 = math.tanh %63 : vector<8x32xf32>
      %65 = vector.extract_strided_slice %37 {offsets = [48, 0], sizes = [8, 32], strides = [1, 1]} : vector<64x32xf32> to vector<8x32xf32>
      %cst_41 = arith.constant dense<0.000000e+00> : vector<8x32xf32>
      %66 = tpu.matmul %64, %38, %cst_41 {dimension_numbers = #tpu.dot_dimension_numbers<[1], [0], [0], [1], [0, 0, 1, 1], [], []>} : vector<8x32xf32>, vector<32x32xf32>, vector<8x32xf32> -> vector<8x32xf32>
      %67 = arith.addf %65, %66 : vector<8x32xf32>
      %68 = math.tanh %67 : vector<8x32xf32>
      %69 = vector.extract_strided_slice %37 {offsets = [56, 0], sizes = [8, 32], strides = [1, 1]} : vector<64x32xf32> to vector<8x32xf32>
      %cst_42 = arith.constant dense<0.000000e+00> : vector<8x32xf32>
      %70 = tpu.matmul %68, %38, %cst_42 {dimension_numbers = #tpu.dot_dimension_numbers<[1], [0], [0], [1], [0, 0, 1, 1], [], []>} : vector<8x32xf32>, vector<32x32xf32>, vector<8x32xf32> -> vector<8x32xf32>
      %71 = arith.addf %69, %70 : vector<8x32xf32>
      %72 = math.tanh %71 : vector<8x32xf32>
      %c0_43 = arith.constant 0 : index
      %c0_44 = arith.constant 0 : index
      %73 = vector.load %arg11[%c0_43, %c0_44] : memref<8x32xf32, #tpu.memory_space<vmem>>, vector<8x32xf32>
      tpu.vector_store %arg11[%c0_43, %c0_44], %72 {strides = array<i32>} : memref<8x32xf32, #tpu.memory_space<vmem>>, vector<8x32xf32>,
      %cst_45 = arith.constant 0xFF800000 : f32
      %74 = vector.broadcast %cst_45 : f32 to vector<8x1xf32>
      %c0_46 = arith.constant 0 : index
      %c0_47 = arith.constant 0 : index
      %75 = vector.load %arg13[%c0_46, %c0_47] : memref<8x1xf32, #tpu.memory_space<vmem>>, vector<8x1xf32>
      tpu.vector_store %arg13[%c0_46, %c0_47], %74 {strides = array<i32>} : memref<8x1xf32, #tpu.memory_space<vmem>>, vector<8x1xf32>,
      %cst_48 = arith.constant 0.000000e+00 : f32
      %76 = vector.broadcast %cst_48 : f32 to vector<8x1xf32>
      %c0_49 = arith.constant 0 : index
      %c0_50 = arith.constant 0 : index
      %77 = vector.load %arg14[%c0_49, %c0_50] : memref<8x1xf32, #tpu.memory_space<vmem>>, vector<8x1xf32>
      tpu.vector_store %arg14[%c0_49, %c0_50], %76 {strides = array<i32>} : memref<8x1xf32, #tpu.memory_space<vmem>>, vector<8x1xf32>,
    } else {
    }
    %c0 = arith.constant 0 : index
    %c0_1 = arith.constant 0 : index
    %3 = vector.load %arg12[%c0, %c0_1] : memref<8x32xf32, #tpu.memory_space<vmem>>, vector<8x32xf32>
    %4 = arith.truncf %3 : vector<8x32xf32> to vector<8x32xbf16>
    %c0_2 = arith.constant 0 : index
    %c0_3 = arith.constant 0 : index
    %5 = vector.load %arg7[%c0_2, %c0_3] : memref<32x128xbf16, #tpu.memory_space<vmem>>, vector<32x128xbf16>
    %cst = arith.constant dense<0.000000e+00> : vector<8x128xf32>
    %6 = tpu.matmul %4, %5, %cst {dimension_numbers = #tpu.dot_dimension_numbers<[1], [0], [0], [1], [0, 0, 1, 1], [], []>} : vector<8x32xbf16>, vector<32x128xbf16>, vector<8x128xf32> -> vector<8x128xf32>
    %c0_4 = arith.constant 0 : index
    %c0_5 = arith.constant 0 : index
    %7 = vector.load %arg8[%c0_4, %c0_5] : memref<1x128xf32, #tpu.memory_space<vmem>>, vector<1x128xf32>
    %8 = vector.broadcast %7 : vector<1x128xf32> to vector<8x128xf32>
    %9 = arith.addf %6, %8 : vector<8x128xf32>
    %c0_6 = arith.constant 0 : index
    %c0_7 = arith.constant 0 : index
    %10 = vector.load %arg9[%c0_6, %c0_7] : memref<8x128xf32, #tpu.memory_space<vmem>>, vector<8x128xf32>
    tpu.vector_store %arg9[%c0_6, %c0_7], %9 {strides = array<i32>} : memref<8x128xf32, #tpu.memory_space<vmem>>, vector<8x128xf32>,
    %c0_8 = arith.constant 0 : index
    %c0_9 = arith.constant 0 : index
    %11 = vector.load %arg13[%c0_8, %c0_9] : memref<8x1xf32, #tpu.memory_space<vmem>>, vector<8x1xf32>
    %cst_10 = arith.constant dense<0xFF800000> : vector<8xf32>
    %12 = vector.multi_reduction <maximumf>, %9, %cst_10 [1] : vector<8x128xf32> to vector<8xf32>
    %13 = vector.shape_cast %12 : vector<8xf32> to vector<8x1xf32>
    %14 = arith.maximumf %11, %13 : vector<8x1xf32>
    %c0_11 = arith.constant 0 : index
    %c0_12 = arith.constant 0 : index
    %15 = vector.load %arg14[%c0_11, %c0_12] : memref<8x1xf32, #tpu.memory_space<vmem>>, vector<8x1xf32>
    %16 = arith.subf %11, %14 : vector<8x1xf32>
    %17 = math.exp %16 : vector<8x1xf32>
    %18 = arith.mulf %15, %17 : vector<8x1xf32>
    %19 = vector.broadcast %14 : vector<8x1xf32> to vector<8x128xf32>
    %20 = arith.subf %9, %19 : vector<8x128xf32>
    %21 = math.exp %20 : vector<8x128xf32>
    %cst_13 = arith.constant dense<0.000000e+00> : vector<8xf32>
    %22 = vector.multi_reduction <add>, %21, %cst_13 [1] : vector<8x128xf32> to vector<8xf32>
    %23 = vector.shape_cast %22 : vector<8xf32> to vector<8x1xf32>
    %24 = arith.addf %18, %23 : vector<8x1xf32>
    %c0_14 = arith.constant 0 : index
    %c0_15 = arith.constant 0 : index
    %25 = vector.load %arg14[%c0_14, %c0_15] : memref<8x1xf32, #tpu.memory_space<vmem>>, vector<8x1xf32>
    tpu.vector_store %arg14[%c0_14, %c0_15], %24 {strides = array<i32>} : memref<8x1xf32, #tpu.memory_space<vmem>>, vector<8x1xf32>,
    %c0_16 = arith.constant 0 : index
    %c0_17 = arith.constant 0 : index
    %26 = vector.load %arg13[%c0_16, %c0_17] : memref<8x1xf32, #tpu.memory_space<vmem>>, vector<8x1xf32>
    tpu.vector_store %arg13[%c0_16, %c0_17], %14 {strides = array<i32>} : memref<8x1xf32, #tpu.memory_space<vmem>>, vector<8x1xf32>,
    %c1_i32 = arith.constant 1 : i32
    %27 = arith.cmpi eq, %arg0, %c1_i32 : i32
    %28 = arith.extui %27 : i1 to i32
    %c0_i32_18 = arith.constant 0 : i32
    %29 = arith.cmpi ne, %28, %c0_i32_18 : i32
    scf.if %29 {
      %c0_19 = arith.constant 0 : index
      %c0_20 = arith.constant 0 : index
      %30 = vector.load %arg13[%c0_19, %c0_20] : memref<8x1xf32, #tpu.memory_space<vmem>>, vector<8x1xf32>
      %c0_21 = arith.constant 0 : index
      %c0_22 = arith.constant 0 : index
      %31 = vector.load %arg14[%c0_21, %c0_22] : memref<8x1xf32, #tpu.memory_space<vmem>>, vector<8x1xf32>
      %32 = math.log %31 : vector<8x1xf32>
      %33 = arith.addf %30, %32 : vector<8x1xf32>
      %c0_23 = arith.constant 0 : index
      %c0_24 = arith.constant 0 : index
      %34 = vector.load %arg10[%c0_23, %c0_24] : memref<8x1xf32, #tpu.memory_space<vmem>>, vector<8x1xf32>
      tpu.vector_store %arg10[%c0_23, %c0_24], %33 {strides = array<i32>} : memref<8x1xf32, #tpu.memory_space<vmem>>, vector<8x1xf32>,
    } else {
    }
    return
  }
  func.func @transform_0(%arg0: i32, %arg1: memref<64xi32, #tpu.memory_space<smem>>) -> (i32, i32) {
    %c0_i32 = arith.constant 0 : i32
    %c0_i32_0 = arith.constant 0 : i32
    %c0_i32_1 = arith.constant 0 : i32
    return %c0_i32, %c0_i32_0 : i32, i32
  }
  func.func @transform_1(%arg0: i32, %arg1: memref<64xi32, #tpu.memory_space<smem>>) -> (i32, i32) {
    %c0_i32 = arith.constant 0 : i32
    %c0_i32_0 = arith.constant 0 : i32
    %c0_i32_1 = arith.constant 0 : i32
    return %c0_i32, %c0_i32_0 : i32, i32
  }
  func.func @transform_2(%arg0: i32, %arg1: memref<64xi32, #tpu.memory_space<smem>>) -> (i32, i32) {
    %c0_i32 = arith.constant 0 : i32
    %c0_i32_0 = arith.constant 0 : i32
    %c0_i32_1 = arith.constant 0 : i32
    return %c0_i32, %c0_i32_0 : i32, i32
  }
  func.func @transform_3(%arg0: i32, %arg1: memref<64xi32, #tpu.memory_space<smem>>) -> (i32, i32) {
    %c0_i32 = arith.constant 0 : i32
    %c0_i32_0 = arith.constant 0 : i32
    %c0_i32_1 = arith.constant 0 : i32
    return %c0_i32, %c0_i32_0 : i32, i32
  }
  func.func @transform_4(%arg0: i32, %arg1: memref<64xi32, #tpu.memory_space<smem>>) -> (i32, i32) {
    %c0_i32 = arith.constant 0 : i32
    %c0_i32_0 = arith.constant 0 : i32
    %c0_i32_1 = arith.constant 0 : i32
    return %c0_i32, %c0_i32_0 : i32, i32
  }
  func.func @transform_5(%arg0: i32, %arg1: memref<64xi32, #tpu.memory_space<smem>>) -> (i32, i32) {
    %c0_i32 = arith.constant 0 : i32
    %c0_i32_0 = arith.constant 0 : i32
    return %c0_i32, %arg0 : i32, i32
  }
  func.func @transform_6(%arg0: i32, %arg1: memref<64xi32, #tpu.memory_space<smem>>) -> (i32, i32) {
    %c0_i32 = arith.constant 0 : i32
    %c0_i32_0 = arith.constant 0 : i32
    return %c0_i32, %arg0 : i32, i32
  }
  func.func @transform_7(%arg0: i32, %arg1: memref<64xi32, #tpu.memory_space<smem>>) -> (i32, i32) {
    %c0_i32 = arith.constant 0 : i32
    %c0_i32_0 = arith.constant 0 : i32
    return %c0_i32, %arg0 : i32, i32
  }
  func.func @transform_8(%arg0: i32, %arg1: memref<64xi32, #tpu.memory_space<smem>>) -> (i32, i32) {
    %c0_i32 = arith.constant 0 : i32
    %c0_i32_0 = arith.constant 0 : i32
    %c0_i32_1 = arith.constant 0 : i32
    return %c0_i32, %c0_i32_0 : i32, i32
  }
  func.func @transform_9(%arg0: i32, %arg1: memref<64xi32, #tpu.memory_space<smem>>) -> (i32, i32) {
    %c0_i32 = arith.constant 0 : i32
    %c0_i32_0 = arith.constant 0 : i32
    %c0_i32_1 = arith.constant 0 : i32
    return %c0_i32, %c0_i32_0 : i32, i32
  }
}

</mosaic_0001>

<bundles_post_ra>
// kernel: decoder_forward.3
= control target key start
LH: loop header
LB: loop body
LE: loop exit
PB: predicated region body
PF: predicated region fallthrough
CT: control target
= control target key end

     0   :  { %s224_s9 = smov 0   ;;  %s253_s0 = inlined_call_operand.vmem [shape: f32[8,256], index: 0, kind: input, shape index: {}]   ;;  %s254_s1 = inlined_call_operand.vmem [shape: f32[8,1], index: 1, kind: input, shape index: {}]   ;;  %s255_s2 = inlined_call_operand.vmem [shape: f32[8,256], index: 2, kind: output, shape index: {}]  }
   0x1 LB: > { %s201_s10 = sadd.s32 4294967295, %s226_s9   ;;  %p205_p0 = scmp.ge.s32.totalorder %s226_s9, 1  ;;  %s226_s9 = sphi %s224_s9, %s12_s9  }
   0x2   : > { %p111_p1 = scmp.lt.s32.totalorder %s226_s9, 3 }
   0x4   : > { %p112_p2 = pnand %p205_p0, %p111_p1 }
   0x5   : > { %p131_p3 = scmp.lt.s32.totalorder (!%p112_p2), %s201_s10, 1 }
   0x6   : > { %115 = sbr.rel (%p112_p2) target bundleno = 131 (0x83), region = 28 }
   0xb   : > { %v140_v0 = vld [vmem:[%s254_s1] sm:$0xff]  ;;  %v228_v1 = vmov 0   ;;  %s257_s10 = smov (!%p131_p3, %s201_s10), 1 }
   0xc   : > { %219 = vset.pattern.permute.xlu0 %v228_v1  ;;  %s206_s13 = sshll.u32 %s257_s10, 3 }
   0xd   : > { %143 = vperm.xlu0 %219, %v140_v0   ;;  %s134_s16 = scalar_lea.vmem %s253_s0, %s206_s13  ;;  %s138_s19 = scalar_lea.vmem %s255_s2, %s206_s13 }
   0xe   : > { %v139_v2 = vld [vmem:[%s134_s16] sm:$0xff] }
  0x7f   : > { %v144_v3 = vpop.permute.xlu0 %143 }
  0x80   : > { %v146_v4 = vsub.f32 %v139_v2, %v144_v3 }
  0x82   : > { %147 = vst [vmem:[%s138_s19] sm:$0xff] %v146_v4 }
  0x83 PF: > { %s12_s9 = sadd.s32 1, %s226_s9  }
  0x84   : > { %p9_p4 = scmp.ge.s32.totalorder %s12_s9, 4  }
  0x86   :  { %11 = sbr.rel (!%p9_p4) target bundleno = 1 (0x1), region = 58 }

// kernel: decoder_forward.2
= control target key start
LH: loop header
LB: loop body
LE: loop exit
PB: predicated region body
PF: predicated region fallthrough
CT: control target
= control target key end

     0   :  { %s1033_s16 = smov [#allocation7]   ;;  %s1263_s0 = inlined_call_operand.vmem [shape: s32[64], index: 0, kind: input, shape index: {}]   ;;  %s1264_s1 = inlined_call_operand.vmem [shape: f32[8,32], index: 1, kind: input, shape index: {}]   ;;  %s1265_s2 = inlined_call_operand.vmem [shape: f32[160,32], index: 2, kind: input, shape index: {}]   ;;  %s1266_s3 = inlined_call_operand.vmem [shape: bf16[32,32], index: 3, kind: input, shape index: {}]   ;;  %s1267_s4 = inlined_call_operand.vmem [shape: f32[32,32], index: 4, kind: input, shape index: {}]   ;;  %s1268_s5 = inlined_call_operand.vmem [shape: f32[1,32], index: 5, kind: input, shape index: {}]   ;;  %s1269_s6 = inlined_call_operand.vmem [shape: bf16[32,256], index: 6, kind: input, shape index: {}]   ;;  %s1270_s7 = inlined_call_operand.vmem [shape: f32[1,256], index: 7, kind: input, shape index: {}]   ;;  %s1271_s8 = inlined_call_operand.vmem [shape: f32[8,256], index: 8, kind: output, shape index: {0}]   ;;  %s1272_s9 = inlined_call_operand.vmem [shape: f32[8,1], index: 9, kind: output, shape index: {1}]   ;;  %s1273_s10 = inlined_call_operand.vmem [shape: f32[8,32], index: 10, kind: output, shape index: {2}]  }
   0x1   :  { %s17_s15 = sshll.u32 %s1263_s0, 4  ;;  %s18_s15 = int_to_ptr.vmem [resolvable:$true] %s17_s15 }
   0x2   :  { %20 = dma.vmem_to_smem %s18_s15, 16, %s1033_s16, [#allocation6] }
   0x3   :  { %1015 = dma.done.wait [#allocation6], 16 }
   0x4   :  { %1016 = vsyncadd [#allocation6], 4294967280 }
   0x5   :  { %23 = sfence }
   0x6   :  { %s1095_s17 = smov 0   ;;  %s1097_s18 = smov 0  }
   0x7   :  { %s1099_s19 = smov 0  }
   0x8 LB: > { %s1111_s0 = sadd.s32 4294967295, %s1027_s19   ;;  %s1114_s20 = sadd.s32 1, %s1027_s19   ;;  %s1027_s19 = sphi %s1099_s19, %s1276_s19   ;;  %s1023_s18 = sphi %s1097_s18, %s1275_s18   ;;  %s1019_s17 = sphi %s1095_s17, %s1274_s17  }
   0x9   : > { %s138_s21 = ssub.s32 %s1027_s19, %s1114_s20  ;;  %s141_s22 = sadd.s32 1, %s1023_s18 }
   0xa   : > { %p139_p0 = scmp.eq.s32.totalorder %s138_s21, 0  ;;  %p148_p1 = scmp.ne.s32.totalorder %s1023_s18, %s1019_s17 }
   0xb   : > { %p149_p2 = scmp.eq.s32.totalorder %s1027_s19, 0  ;;  %p872_p4 = scmp.ge.s32.totalorder %s1027_s19, 2 }
   0xc   : > { %s1123_s23 = scalar_select %p139_p0, %s1023_s18, %s141_s22  }
   0xd   : > { %p150_p3 = por %p149_p2, %p148_p1  ;;  %283 = sbr.rel (%p872_p4) target bundleno = 26 (0x1a), region = 36 }
  0x12   : > { %286 = sbr.rel (!%p150_p3) target bundleno = 26 (0x1a), region = 40  ;;  %s288_s24 = sand.u32 (%p150_p3), 1, %s1023_s18  }
  0x13   : > { %s874_s25 = sshll.u32 (%p150_p3), %s1027_s19, 2  ;;  %s873_s26 = sshll.u32 (%p150_p3), %s288_s24, 4 }
  0x14   : > { %s292_s29 = scalar_lea.vmem (%p150_p3), %s1269_s6, %s874_s25  ;;  %s290_s30 = scalar_lea.vmem (%p150_p3), [#allocation8], %s873_s26 }
  0x15   : > { %v309_v0 = vld [vmem:[%s292_s29] sm:$0xf] (%p150_p3)  ;;  %v311_v1 = vld [vmem:[%s292_s29 + $0x8] sm:$0xf] (%p150_p3)  ;;  %v313_v2 = vld [vmem:[%s292_s29 + $0x10] sm:$0xf] (%p150_p3) }
  0x16   : > { %310 = vst [vmem:[%s290_s30] sm:$0xf] (%p150_p3), %v309_v0  ;;  %v315_v3 = vld [vmem:[%s292_s29 + $0x18] sm:$0xf] (%p150_p3) }
  0x17   : > { %312 = vst [vmem:[%s290_s30 + $0x4] sm:$0xf] %v311_v1 }
  0x18   : > { %314 = vst [vmem:[%s290_s30 + $0x8] sm:$0xf] %v313_v2 }
  0x19   : > { %316 = vst [vmem:[%s290_s30 + $0xc] sm:$0xf] %v315_v3 }
  0x1a PF: > { %p875_p5 = scmp.ge.s32.totalorder %s1027_s19, 1  ;;  %p353_p6 = scmp.lt.s32.totalorder %s1027_s19, 3 }
  0x1c   : > { %p354_p7 = pnand %p875_p5, %p353_p6 }
  0x1d   : > { %s360_s11 = sand.u32 (!%p354_p7), 1, %s1019_s17   ;;  %p397_p8 = scmp.lt.s32.totalorder (!%p354_p7), %s1111_s0, 1 }
  0x1e   : > { %357 = sbr.rel (%p354_p7) target bundleno = 1694 (0x69e), region = 85  ;;  %s1135_s12 = sshll.u32 (!%p354_p7), %s360_s11, 4 }
  0x1f   : > { %s362_s25 = scalar_lea.vmem (!%p354_p7), [#allocation8], %s1135_s12  ;;  %p878_p9 = scmp.ne.s32.totalorder (!%p354_p7), %s1111_s0, 0 }
  0x23   : > { %s1138_s13 = scalar_select %p397_p8, %s1111_s0, 1 }
  0x24   : > { %408 = sbr.rel (%p878_p9) target bundleno = 1176 (0x498), region = 93  ;;  %s1029_s17 = smov (!%p878_p9), 0  }
  0x25   : > { %s399_s16 = scalar_lea.vmem %s1270_s7, %s1138_s13  ;;  %s877_s21 = sshll.u32 %s1138_s13, 3 }
  0x26   : > { %s1148_s24 = scalar_lea.vmem %s1271_s8, %s877_s21 }
  0x29 LB: >> { %s415_s26 = sld [smem:[#allocation7 + %s1031_s17]]  ;;  %vm423_vm0 = vcmask 253952   ;;  %s422_s30 = scalar_lea.vmem [#allocation5], %s1031_s17  ;;  %s1031_s17 = sphi %s1029_s17, %s414_s17  }
  0x2a   : >> { %s414_s17 = sadd.s32 1, %s1031_s17  }
  0x2b   : >> { %p411_p12 = scmp.ge.s32.totalorder %s414_s17, 64  }
  0x2c   : > { %v1158_v5 = vld [vmem:[%s1267_s4 + $0x18] sm:$0xff] (%p411_p12)  ;;  %v919_v6 = vld [vmem:[%s1266_s3 + $0x8] sm:$0xff] (%p411_p12)  ;;  %v1166_v7 = vld [vmem:[%s1267_s4 + $0x10] sm:$0xff] (%p411_p12)  ;;  %vm457_vm1 = vcmask (%p411_p12), 261120   ;;  %vm706_vm2 = vcmask (%p411_p12), 7168   ;;  %v1034_v61 = vmov (%p411_p12), -inf  }
  0x2d   : > { %519 = vmatpush.msra.mxu2 (%p411_p12), %v1158_v5  ;;  %v1172_v8 = vld [vmem:[%s1267_s4 + $0x8] sm:$0xff] (%p411_p12)  ;;  %476 = vmatpush.bf16.msra.mxu0 (%p411_p12), %v919_v6  ;;  %v918_v9 = vld [vmem:[%s1266_s3] sm:$0xff] (%p411_p12)  ;;  %707 = vst.msk [vmem:[#allocation3] sm:$0xff] (%p411_p12), %vm706_vm2, %v1034_v61  ;;  %v1035_v62 = vmov (%p411_p12), 0.0  }
  0x2e   : > { %923 = vmatpush.bf16.msra.mxu3 (%p411_p12), %v919_v6  ;;  %922 = vmatpush.bf16.msra.mxu1 (%p411_p12), %v919_v6  ;;  %v499_v12 = vld [vmem:[%s1267_s4] sm:$0xff] (%p411_p12)  ;;  %708 = vst.msk [vmem:[#allocation4] sm:$0xff] (%p411_p12), %vm706_vm2, %v1035_v62 }
  0x2f   : >> { %p416_p10 = scmp.gt.s32.totalorder %s415_s26, 0  ;;  %p879_p11 = scmp.lt.s32.totalorder %s415_s26, 159  ;;  %520 = vmatpush.msra.mxu2 (%p411_p12), %v1166_v7  ;;  %v503_v13 = vld [vmem:[%s1264_s1] sm:$0xff] (%p411_p12) }
  0x30   : > { %v1206_v18 = vld [vmem:[%s1268_s5] ss:$0 sm:$0xff] (%p411_p12) }
  0x31   : >> { %s1278_s26 = smov (!%p416_p10, %s415_s26), 0  ;;  %413 = sbr.rel (!%p411_p12) target bundleno = 41 (0x29), region = 160  ;;  %521 = vmatpush.msra.mxu2 (%p411_p12), %v1172_v8  ;;  %477 = vmatpush.bf16.msra.mxu0 (%p411_p12), %v918_v9 }
  0x32   : >> { %s1280_s26 = smov (!%p879_p11, %s1278_s26), 159  ;;  %925 = vmatpush.bf16.msra.mxu3 (%p411_p12), %v918_v9  ;;  %924 = vmatpush.bf16.msra.mxu1 (%p411_p12), %v918_v9 }
  0x33   : >> { %s420_s29 = scalar_lea.vmem %s1265_s2, %s1280_s26  ;;  %522 = vmatpush.msra.mxu2 (%p411_p12), %v499_v12 }
  0x34   : >> { %v421_v4 = vld [vmem:[%s420_s29] sm:$0x1]  ;;  %896 = vmatmul.msk.f32.vlgmr.msra.gmra.mxu2 (%p411_p12), %vm457_vm1, %v503_v13 }
  0x35   : >> { %424 = vst.msk [vmem:[%s422_s30] sm:$0x1] %vm423_vm0, %v421_v4  ;;  %545 = vmatpush.msrb.mxu2 (%p411_p12), %v1158_v5 }
  0x36   : > { %570 = vmatpush.msrb.mxu3 %v1158_v5  ;;  %595 = vmatpush.msrb.mxu1 %v1158_v5 }
  0x37   : > { %546 = vmatpush.msrb.mxu2 %v1166_v7 }
  0x38   : > { %571 = vmatpush.msrb.mxu3 %v1166_v7  ;;  %596 = vmatpush.msrb.mxu1 %v1166_v7 }
  0x39   : > { %547 = vmatpush.msrb.mxu2 %v1172_v8 }
  0x3a   : > { %572 = vmatpush.msrb.mxu3 %v1172_v8  ;;  %597 = vmatpush.msrb.mxu1 %v1172_v8 }
  0x3b   : > { %548 = vmatpush.msrb.mxu2 %v499_v12 }
  0x3c   : > { %v425_v10 = vld [vmem:[#allocation5] sm:$0xff]  ;;  %v426_v11 = vld [vmem:[#allocation5 + $0x8] sm:$0xff]  ;;  %573 = vmatpush.msrb.mxu3 %v499_v12  ;;  %598 = vmatpush.msrb.mxu1 %v499_v12  ;;  %v431_v15 = vld [vmem:[#allocation5 + $0x30] sm:$0xff] }
  0x3d   : > { %v433_v14 = vpack.c.bf16 %v426_v11, %v425_v10  ;;  %620 = vmatpush.msra.mxu2 %v1158_v5  ;;  %v432_v16 = vld [vmem:[#allocation5 + $0x38] sm:$0xff]  ;;  %v427_v24 = vld [vmem:[#allocation5 + $0x10] sm:$0xff]  ;;  %v429_v27 = vld [vmem:[#allocation5 + $0x20] sm:$0xff] }
  0x3e   : > { %v436_v17 = vpack.c.bf16 %v432_v16, %v431_v15  ;;  %v428_v25 = vld [vmem:[#allocation5 + $0x18] sm:$0xff]  ;;  %v430_v28 = vld [vmem:[#allocation5 + $0x28] sm:$0xff] }
  0x3f   : > { %892 = vmatmul.msk.bf16.vlgmr.msra.gmra.mxu0 %vm457_vm1, %v433_v14  ;;  %621 = vmatpush.msra.mxu2 %v1166_v7  ;;  %v434_v26 = vpack.c.bf16 %v428_v25, %v427_v24  ;;  %v435_v29 = vpack.c.bf16 %v430_v28, %v429_v27 }
  0x40   : > { %895 = vmatmul.msk.bf16.vlgmr.msra.gmra.mxu3 %vm457_vm1, %v436_v17 }
  0x41   : > { %622 = vmatpush.msra.mxu2 %v1172_v8  ;;  %645 = vmatpush.msra.mxu3 %v1158_v5 }
  0x42   : > { %894 = vmatmul.msk.bf16.vlgmr.msra.gmra.mxu1 %vm457_vm1, %v435_v29 }
  0x43   : > { %623 = vmatpush.msra.mxu2 %v499_v12  ;;  %646 = vmatpush.msra.mxu3 %v1166_v7 }
  0x44   : > { %670 = vmatpush.msra.mxu1 %v1158_v5 }
  0x45   : > { %647 = vmatpush.msra.mxu3 %v1172_v8 }
  0x46   : > { %671 = vmatpush.msra.mxu1 %v1166_v7 }
  0x47   : > { %648 = vmatpush.msra.mxu3 %v499_v12 }
  0x48   : > { %672 = vmatpush.msra.mxu1 %v1172_v8 }
  0x4a   : > { %673 = vmatpush.msra.mxu1 %v499_v12 }
  0x4f   : > { %893 = vmatmul.msk.bf16.gmra.mxu0 %vm457_vm1, %v434_v26 }
  0xb7   : > { %v524_v21 = vpop.f32.mrf.mxu2 }
  0xbc   : > { %v479_v19 = vpop.f32.mrf.mxu0 }
  0xbd   : > { %v480_v20 = vadd.f32 %v1206_v18, %v479_v19 }
  0xbf   : > { %v527_v22 = vadd.f32 %v524_v21, %v480_v20  ;;  %v489_v42 = vpop.f32.mrf.mxu1 }
  0xc0   : > { %v490_v49 = vadd.f32 %v1206_v18, %v489_v42 }
  0xc1   : > { %963 = vtanh.f32 %v527_v22 }
  0xc3   : > { %v494_v35 = vpop.f32.mrf.mxu3 }
  0xc4   : > { %v481_v30 = vpop.f32.mrf.mxu0  ;;  %v495_v57 = vadd.f32 %v1206_v18, %v494_v35 }
  0xc5   : > { %v482_v31 = vadd.f32 %v1206_v18, %v481_v30 }
  0xc7   : > { %v964_v23 = vpop.eup %963  ;;  %v491_v43 = vpop.f32.mrf.mxu1 }
  0xc8   : > { %529 = vst.msk [vmem:[#allocation2] sm:$0xff] %vm457_vm1, %v964_v23  ;;  %897 = vmatmul.msk.f32.vlgmr.msrb.gmra.mxu2 %vm457_vm1, %v964_v23  ;;  %v492_v53 = vadd.f32 %v1206_v18, %v491_v43 }
  0xc9   : > { %695 = vmatpush.msrb.mxu2 %v1158_v5 }
  0xcb   : > { %696 = vmatpush.msrb.mxu2 %v1166_v7  ;;  %v496_v36 = vpop.f32.mrf.mxu3 }
  0xcc   : > { %v484_v37 = vpop.f32.mrf.mxu0  ;;  %v497_v63 = vadd.f32 %v1206_v18, %v496_v36 }
  0xcd   : > { %697 = vmatpush.msrb.mxu2 %v1172_v8  ;;  %v485_v38 = vadd.f32 %v1206_v18, %v484_v37 }
  0xcf   : > { %698 = vmatpush.msrb.mxu2 %v499_v12 }
  0xd4   : > { %v486_v44 = vpop.f32.mrf.mxu0 }
  0xd5   : > { %v487_v45 = vadd.f32 %v1206_v18, %v486_v44 }
 0x14b   : > { %v550_v32 = vpop.f32.mrf.mxu2 }
 0x14c   : > { %v553_v33 = vadd.f32 %v550_v32, %v482_v31 }
 0x14e   : > { %965 = vtanh.f32 %v553_v33 }
 0x154   : > { %v966_v34 = vpop.eup %965 }
 0x155   : > { %898 = vmatmul.msk.f32.vlgmr.msrb.gmra.mxu3 %vm457_vm1, %v966_v34 }
 0x1d8   : > { %v575_v39 = vpop.f32.mrf.mxu3 }
 0x1d9   : > { %v578_v40 = vadd.f32 %v575_v39, %v485_v38 }
 0x1db   : > { %967 = vtanh.f32 %v578_v40 }
 0x1e1   : > { %v968_v41 = vpop.eup %967 }
 0x1e2   : > { %899 = vmatmul.msk.f32.vlgmr.msrb.gmra.mxu1 %vm457_vm1, %v968_v41 }
 0x25f   : > { %v600_v46 = vpop.f32.mrf.mxu1 }
 0x260   : > { %v603_v47 = vadd.f32 %v600_v46, %v487_v45 }
 0x262   : > { %969 = vtanh.f32 %v603_v47 }
 0x268   : > { %v970_v48 = vpop.eup %969 }
 0x269   : > { %900 = vmatmul.msk.f32.vlgmr.msra.gmra.mxu2 %vm457_vm1, %v970_v48 }
 0x2ec   : > { %v625_v50 = vpop.f32.mrf.mxu2 }
 0x2ed   : > { %v628_v51 = vadd.f32 %v625_v50, %v490_v49 }
 0x2ef   : > { %971 = vtanh.f32 %v628_v51 }
 0x2f5   : > { %v972_v52 = vpop.eup %971 }
 0x2f6   : > { %901 = vmatmul.msk.f32.vlgmr.msra.gmra.mxu3 %vm457_vm1, %v972_v52 }
 0x379   : > { %v650_v54 = vpop.f32.mrf.mxu3 }
 0x37a   : > { %v653_v55 = vadd.f32 %v650_v54, %v492_v53 }
 0x37c   : > { %973 = vtanh.f32 %v653_v55 }
 0x382   : > { %v974_v56 = vpop.eup %973 }
 0x383   : > { %902 = vmatmul.msk.f32.vlgmr.msra.gmra.mxu1 %vm457_vm1, %v974_v56 }
 0x400   : > { %v675_v58 = vpop.f32.mrf.mxu1 }
 0x401   : > { %v678_v59 = vadd.f32 %v675_v58, %v495_v57 }
 0x403   : > { %975 = vtanh.f32 %v678_v59 }
 0x409   : > { %v976_v60 = vpop.eup %975 }
 0x40a   : > { %903 = vmatmul.msk.f32.vlgmr.msrb.gmra.mxu2 %vm457_vm1, %v976_v60 }
 0x48d   : > { %v700_v0 = vpop.f32.mrf.mxu2 }
 0x48e   : > { %v703_v1 = vadd.f32 %v700_v0, %v497_v63 }
 0x490   : > { %977 = vtanh.f32 %v703_v1 }
 0x496   : > { %v978_v2 = vpop.eup %977 }
 0x497   : > { %705 = vst.msk [vmem:[%s1273_s10] sm:$0xff] %vm457_vm1, %v978_v2 }
 0x498 PF: > { %v921_v3 = vld [vmem:[%s362_s25 + $0x8] sm:$0xff]  ;;  %v920_v4 = vld [vmem:[%s362_s25] sm:$0xff]  ;;  %vm731_vm3 = vcmask 261120   ;;  %v1036_v11 = vmov 0   ;;  %vm769_vm4 = vcmask 7168   ;;  %p913_p13 = scmp.ne.s32.totalorder %s1111_s0, 1 }
 0x499   : > { %741 = vmatpush.bf16.msra.mxu0 %v921_v3  ;;  %v709_v5 = vld [vmem:[#allocation2] sm:$0xff]  ;;  %979 = vset.pattern.permute.xlu0 %v1036_v11  ;;  %v749_v12 = vld [vmem:[#allocation3] sm:$0xff]  ;;  %v753_v22 = vld [vmem:[#allocation4] sm:$0xff] }
 0x49a   : > { %v710_v6 = vpack.c.bf16 %v709_v5, %v709_v5  ;;  %v980_v7 = vld [vmem:[%s399_s16] ss:$0 sm:$0xff] }
 0x49d   : > { %742 = vmatpush.bf16.msra.mxu0 %v920_v4 }
 0x4a0   : > { %912 = vmatmul.msk.bf16.vlgmr.msra.gmra.mxu0 %vm731_vm3, %v710_v6 }
 0x51d   : > { %v744_v8 = vpop.f32.mrf.mxu0 }
 0x51e   : > { %v745_v9 = vadd.f32 %v980_v7, %v744_v8 }
 0x520   : > { %748 = vst [vmem:[%s1148_s24] sm:$0xff] %v745_v9  ;;  %750 = vmax.xlane.f32.xlu0 %v745_v9 }
 0x525   : > { %v746_v10 = vpop.f32.mrf.mxu0 }
 0x593   : > { %v751_v13 = vpop.xlane.xlu0 %750 }
 0x594   : > { %v752_v14 = vmax.f32 %v749_v12, %v751_v13 }
 0x596   : > { %v754_v15 = vsub.f32 %v749_v12, %v752_v14  ;;  %771 = vst.msk [vmem:[#allocation3] sm:$0xff] %vm769_vm4, %v752_v14  ;;  %760 = vperm.xlu0 %979, %v752_v14  }
 0x598   : > { %v755_v20 = vmul.f32 1.442695, %v754_v15 }
 0x608   : > { %v761_v16 = vpop.permute.xlu0 %760 }
 0x609   : > { %v763_v17 = vsub.f32 %v745_v9, %v761_v16 }
 0x60b   : > { %v764_v18 = vmul.f32 1.442695, %v763_v17 }
 0x60d   : > { %981 = vpow2.f32 %v764_v18 }
 0x60e   : > { %983 = vpow2.f32 %v755_v20 }
 0x613   : > { %v982_v19 = vpop.eup %981 }
 0x614   : > { %766 = vadd.xlane.f32.xlu1 %v982_v19  ;;  %v984_v21 = vpop.eup %983 }
 0x615   : > { %v757_v23 = vmul.f32 %v984_v21, %v753_v22 }
 0x686   : > { %775 = sbr.rel (%p913_p13) target bundleno = 1694 (0x69e), region = 104 }
 0x687   : > { %v767_v24 = vpop.xlane.xlu1 %766 }
 0x688   : > { %v768_v25 = vadd.f32 %v767_v24, %v757_v23 }
 0x68a   : > { %770 = vst.msk [vmem:[#allocation4] sm:$0xff] %vm769_vm4, %v768_v25 }
 0x68b   : > { %v776_v28 = vld [vmem:[#allocation3] sm:$0xff] }
 0x691   : > { %v777_v26 = vld [vmem:[#allocation4] sm:$0xff] }
 0x692   : > { %985 = vlog2.f32 %v777_v26 }
 0x698   : > { %v986_v27 = vpop.eup %985 }
 0x699   : > { %v779_v29 = vmul.f32 0.6931472, %v986_v27 }
 0x69b   : > { %v780_v30 = vadd.f32 %v779_v29, %v776_v28 }
 0x69d   : > { %781 = vst.msk [vmem:[%s1272_s9] sm:$0xff] %vm769_vm4, %v780_v30 }
 0x69e PF: > { %p26_p0 = scmp.ge.s32.totalorder %s1114_s20, 4   ;;  %s1274_s17 = smov %s1023_s18 }
 0x69f   : > { %s1275_s18 = smov %s1123_s23  ;;  %s1276_s19 = smov %s1114_s20 }
 0x6a0   :  { %28 = sbr.rel (!%p26_p0) target bundleno = 8 (0x8), region = 171 }

</bundles_post_ra>
